<compile_context>
chip_gen: v6e
topology: v6e:2x2x1
jax: 0.10.0
libtpu: 0.0.40
codegen_flags: <defaults>
</compile_context>

<pallas_src>
import jax
import jax.numpy as jnp
from jax.experimental import pallas as pl
from jax.experimental.pallas import tpu as pltpu


def cnn_kernel(x_ref, w1_ref, b1_ref, w2_ref, b2_ref, o_ref):
    # x_ref : (bn, d_model, tl)    w1_ref: (hidden, d_model) bf16    b1_ref: (hidden, 1)  f32
    # o_ref : (bn, d_model, tl)    w2_ref: (d_model, hidden) bf16    b2_ref: (d_model, 1) f32
    bn = x_ref.shape[0]
    w1 = w1_ref[...]
    b1 = b1_ref[...]
    w2 = w2_ref[...]
    b2 = b2_ref[...]
    for i in range(bn):                              # static unroll over folded batches
        x = x_ref[i].astype(jnp.bfloat16)            # bf16 MXU inputs, f32 accumulation
        # Conv1d(k=1) #1  ==  W1 @ x + b1, then ReLU  (bias broadcasts along lanes)
        h = jnp.dot(w1, x, preferred_element_type=jnp.float32) + b1
        h = jnp.maximum(h, 0.0)
        # dropout (eval mode) is identity
        # TODO(synk): training-mode dropout would use pltpu.prng_seed / prng_random_bits here.
        # Conv1d(k=1) #2  ==  W2 @ h + b2
        o = jnp.dot(w2, h.astype(jnp.bfloat16),
                    preferred_element_type=jnp.float32) + b2
        o_ref[i] = o.astype(o_ref.dtype)


def cnn_forward(x_ncl, w1, b1, w2, b2, *, tl=1024, out_dtype=None):
    """x_ncl: (N, d_model, L) f32 (PyTorch Conv1d layout).
    w1: (hidden, d_model), b1: (hidden,), w2: (d_model, hidden), b2: (d_model,)."""
    N, d_model, L = x_ncl.shape
    hidden = w1.shape[0]
    out_dtype = x_ncl.dtype if out_dtype is None else out_dtype

    # --- VMEM budget (re-derived so the same tiling fits v7x's 64 MiB with headroom) ---
    VMEM_BUDGET = 40 * 1024 * 1024
    xbytes = jnp.dtype(x_ncl.dtype).itemsize
    obytes = jnp.dtype(out_dtype).itemsize
    wbytes = 2 * (hidden * d_model * 2) + (hidden + d_model) * 4  # bf16 weights + f32 biases

    def _vmem_bytes(bn_, tl_):
        io = 2 * bn_ * d_model * tl_ * (xbytes + obytes)  # double-buffered in + out blocks
        h = bn_ * hidden * tl_ * 4                        # f32 intermediate live in-kernel
        return io + h + wbytes

    # --- length tile: lane-dense 128-multiple, as big as the budget (and L) allow ---
    L128 = pl.cdiv(L, 128) * 128
    tl = max(128, (min(tl, L128) // 128) * 128)
    while tl > 128 and _vmem_bytes(1, tl) > VMEM_BUDGET:
        tl -= 128
    L_pad = pl.cdiv(L, tl) * tl
    n_l = L_pad // tl

    # --- batch folding: when the length fits in one tile, pack several batches per step
    #     to amortize per-step overhead, but keep >= 2 grid steps for v7x's 2 TensorCores.
    if n_l >= 2:
        bn = 1
    else:
        bn = max(1, N // 2)
        while bn > 1 and _vmem_bytes(bn, tl) > VMEM_BUDGET:
            bn = max(1, bn // 2)
    N_pad = pl.cdiv(N, bn) * bn

    if (N_pad, L_pad) != (N, L):
        x_p = jnp.pad(x_ncl, ((0, N_pad - N), (0, 0), (0, L_pad - L)))
    else:
        x_p = x_ncl

    # bf16 weights halve weight DMA bytes and double MXU throughput; biases stay f32.
    w1_c = w1.astype(jnp.bfloat16)
    w2_c = w2.astype(jnp.bfloat16)
    b1_c = b1.reshape(hidden, 1).astype(jnp.float32)
    b2_c = b2.reshape(d_model, 1).astype(jnp.float32)

    grid = (N_pad // bn, L_pad // tl)  # both axes parallel -> megacore / v7x 2-TC sharding

    def _wspec(shape, weight_mode):
        # grid-invariant weights/biases: same block every step (resident in VMEM)
        if weight_mode is None:
            return pl.BlockSpec(shape, lambda n, l: (0, 0))
        return pl.BlockSpec(shape, lambda n, l: (0, 0), pipeline_mode=weight_mode)

    def _build(weight_mode):
        return pl.pallas_call(
            cnn_kernel,
            out_shape=jax.ShapeDtypeStruct((N_pad, d_model, L_pad), out_dtype),
            grid_spec=pltpu.PrefetchScalarGridSpec(
                num_scalar_prefetch=0,
                grid=grid,
                in_specs=[
                    pl.BlockSpec((bn, d_model, tl), lambda n, l: (n, 0, l)),
                    _wspec((hidden, d_model), weight_mode),
                    _wspec((hidden, 1), weight_mode),
                    _wspec((d_model, hidden), weight_mode),
                    _wspec((d_model, 1), weight_mode),
                ],
                out_specs=pl.BlockSpec((bn, d_model, tl), lambda n, l: (n, 0, l)),
            ),
            compiler_params=pltpu.CompilerParams(
                dimension_semantics=("parallel", "parallel"),
                # above v5e's 16 MiB scoped default, with headroom under v7x's 64 MiB
                vmem_limit_bytes=48 * 1024 * 1024,
            ),
        )

    # single-buffer the invariant weight blocks; fall back to default double-buffering
    # if this JAX build rejects pipeline_mode (correctness is identical either way).
    weight_modes = []
    try:
        weight_modes.append(pl.Buffered(buffer_count=1))
    except Exception:
        pass
    weight_modes.append(None)

    out_p = None
    for weight_mode in weight_modes:
        try:
            out_p = _build(weight_mode)(x_p, w1_c, b1_c, w2_c, b2_c)
            break
        except Exception:
            if weight_mode is None:
                raise

    if (N_pad, L_pad) != (N, L):
        out_p = out_p[:N, :, :L]
    return out_p


def xavier_uniform(key, fan_in, fan_out, shape):
    bound = (6.0 / (fan_in + fan_out)) ** 0.5
    return jax.random.uniform(key, shape, jnp.float32, minval=-bound, maxval=bound)


if __name__ == "__main__":
    # Small shapes consistent with the module's forward: x is (N, d_model, L)
    N, d_model, hidden_dim, L = 2, 32, 64, 16

    key = jax.random.PRNGKey(0)
    kx, kw1, kw2 = jax.random.split(key, 3)

    x = jax.random.normal(kx, (N, d_model, L), jnp.float32)

    # nn.Conv1d(d_model, hidden_dim, 1): weight (hidden, d_model, 1) xavier_uniform, bias 0
    w1 = xavier_uniform(kw1, d_model, hidden_dim, (hidden_dim, d_model))
    b1 = jnp.zeros((hidden_dim,), jnp.float32)
    # nn.Conv1d(hidden_dim, d_model, 1): weight (d_model, hidden, 1), bias 0
    w2 = xavier_uniform(kw2, hidden_dim, d_model, (d_model, hidden_dim))
    b2 = jnp.zeros((d_model,), jnp.float32)

    out = cnn_forward(x, w1, b1, w2, b2)
    out = jax.block_until_ready(out)

    # correctness check vs. pure-JAX reference using the same bf16-in / f32-accum path
    cd = jnp.bfloat16
    h_ref = jnp.einsum("hd,ndl->nhl", w1.astype(cd), x.astype(cd),
                       preferred_element_type=jnp.float32) + b1.reshape(1, hidden_dim, 1)
    h_ref = jnp.maximum(h_ref, 0.0)
    ref = jnp.einsum("dh,nhl->ndl", w2.astype(cd), h_ref.astype(cd),
                     preferred_element_type=jnp.float32) + b2.reshape(1, d_model, 1)

    assert out.shape == (N, d_model, L)
    assert jnp.allclose(out, ref, atol=1e-2, rtol=1e-2), float(jnp.max(jnp.abs(out - ref)))

    print("KERNEL_OK")
</pallas_src>

<mosaic_0001>
module attributes {stable_mosaic.version = 11 : i64} {
  func.func @cnn_kernel(%arg0: i32, %arg1: i32, %arg2: memref<1x32x128xf32, #tpu.memory_space<vmem>>, %arg3: memref<64x32xbf16, #tpu.memory_space<vmem>>, %arg4: memref<64x1xf32, #tpu.memory_space<vmem>>, %arg5: memref<32x64xbf16, #tpu.memory_space<vmem>>, %arg6: memref<32x1xf32, #tpu.memory_space<vmem>>, %arg7: memref<1x32x128xf32, #tpu.memory_space<vmem>>) attributes {dimension_semantics = [#tpu.dimension_semantics<parallel>, #tpu.dimension_semantics<parallel>], iteration_bounds = array<i64: 2, 1>, scalar_prefetch = 0 : i64, scratch_operands = 0 : i64, tpu.core_type = #tpu.core_type<tc>, window_params = [{transform_indices = @transform_0, window_bounds = array<i64: 1, 32, 128>}, {pipeline_mode = #tpu.pipeline_mode<synchronous>, transform_indices = @transform_1, window_bounds = array<i64: 64, 32>}, {pipeline_mode = #tpu.pipeline_mode<synchronous>, transform_indices = @transform_2, window_bounds = array<i64: 64, 1>}, {pipeline_mode = #tpu.pipeline_mode<synchronous>, transform_indices = @transform_3, window_bounds = array<i64: 32, 64>}, {pipeline_mode = #tpu.pipeline_mode<synchronous>, transform_indices = @transform_4, window_bounds = array<i64: 32, 1>}, {transform_indices = @transform_5, window_bounds = array<i64: 1, 32, 128>}]} {
    %c0 = arith.constant 0 : index
    %c0_0 = arith.constant 0 : index
    %0 = vector.load %arg3[%c0, %c0_0] : memref<64x32xbf16, #tpu.memory_space<vmem>>, vector<64x32xbf16>
    %c0_1 = arith.constant 0 : index
    %c0_2 = arith.constant 0 : index
    %1 = vector.load %arg4[%c0_1, %c0_2] : memref<64x1xf32, #tpu.memory_space<vmem>>, vector<64x1xf32>
    %c0_3 = arith.constant 0 : index
    %c0_4 = arith.constant 0 : index
    %2 = vector.load %arg5[%c0_3, %c0_4] : memref<32x64xbf16, #tpu.memory_space<vmem>>, vector<32x64xbf16>
    %c0_5 = arith.constant 0 : index
    %c0_6 = arith.constant 0 : index
    %3 = vector.load %arg6[%c0_5, %c0_6] : memref<32x1xf32, #tpu.memory_space<vmem>>, vector<32x1xf32>
    %c0_7 = arith.constant 0 : index
    %c0_8 = arith.constant 0 : index
    %c0_9 = arith.constant 0 : index
    %4 = vector.load %arg2[%c0_7, %c0_8, %c0_9] : memref<1x32x128xf32, #tpu.memory_space<vmem>>, vector<1x32x128xf32>
    %5 = vector.shape_cast %4 : vector<1x32x128xf32> to vector<32x128xf32>
    %6 = arith.truncf %5 : vector<32x128xf32> to vector<32x128xbf16>
    %cst = arith.constant dense<0.000000e+00> : vector<64x128xf32>
    %7 = tpu.matmul %0, %6, %cst {dimension_numbers = #tpu.dot_dimension_numbers<[1], [0], [0], [1], [0, 0, 1, 1], [], []>} : vector<64x32xbf16>, vector<32x128xbf16>, vector<64x128xf32> -> vector<64x128xf32>
    %8 = vector.broadcast %1 : vector<64x1xf32> to vector<64x128xf32>
    %9 = arith.addf %7, %8 : vector<64x128xf32>
    %cst_10 = arith.constant 0.000000e+00 : f32
    %10 = vector.broadcast %cst_10 : f32 to vector<64x128xf32>
    %11 = arith.maximumf %9, %10 : vector<64x128xf32>
    %12 = arith.truncf %11 : vector<64x128xf32> to vector<64x128xbf16>
    %cst_11 = arith.constant dense<0.000000e+00> : vector<32x128xf32>
    %13 = tpu.matmul %2, %12, %cst_11 {dimension_numbers = #tpu.dot_dimension_numbers<[1], [0], [0], [1], [0, 0, 1, 1], [], []>} : vector<32x64xbf16>, vector<64x128xbf16>, vector<32x128xf32> -> vector<32x128xf32>
    %14 = vector.broadcast %3 : vector<32x1xf32> to vector<32x128xf32>
    %15 = arith.addf %13, %14 : vector<32x128xf32>
    %c0_12 = arith.constant 0 : index
    %c0_13 = arith.constant 0 : index
    %c0_14 = arith.constant 0 : index
    %16 = vector.load %arg7[%c0_12, %c0_13, %c0_14] : memref<1x32x128xf32, #tpu.memory_space<vmem>>, vector<1x32x128xf32>
    %17 = vector.shape_cast %16 : vector<1x32x128xf32> to vector<32x128xf32>
    %18 = vector.shape_cast %15 : vector<32x128xf32> to vector<1x32x128xf32>
    tpu.vector_store %arg7[%c0_12, %c0_13, %c0_14], %18 {strides = array<i32>} : memref<1x32x128xf32, #tpu.memory_space<vmem>>, vector<1x32x128xf32>,
    return
  }
  func.func @transform_0(%arg0: i32, %arg1: i32) -> (i32, i32, i32) {
    %c0_i32 = arith.constant 0 : i32
    %c0_i32_0 = arith.constant 0 : i32
    return %arg0, %c0_i32, %arg1 : i32, i32, i32
  }
  func.func @transform_1(%arg0: i32, %arg1: i32) -> (i32, i32) {
    %c0_i32 = arith.constant 0 : i32
    %c0_i32_0 = arith.constant 0 : i32
    %c0_i32_1 = arith.constant 0 : i32
    return %c0_i32, %c0_i32_0 : i32, i32
  }
  func.func @transform_2(%arg0: i32, %arg1: i32) -> (i32, i32) {
    %c0_i32 = arith.constant 0 : i32
    %c0_i32_0 = arith.constant 0 : i32
    %c0_i32_1 = arith.constant 0 : i32
    return %c0_i32, %c0_i32_0 : i32, i32
  }
  func.func @transform_3(%arg0: i32, %arg1: i32) -> (i32, i32) {
    %c0_i32 = arith.constant 0 : i32
    %c0_i32_0 = arith.constant 0 : i32
    %c0_i32_1 = arith.constant 0 : i32
    return %c0_i32, %c0_i32_0 : i32, i32
  }
  func.func @transform_4(%arg0: i32, %arg1: i32) -> (i32, i32) {
    %c0_i32 = arith.constant 0 : i32
    %c0_i32_0 = arith.constant 0 : i32
    %c0_i32_1 = arith.constant 0 : i32
    return %c0_i32, %c0_i32_0 : i32, i32
  }
  func.func @transform_5(%arg0: i32, %arg1: i32) -> (i32, i32, i32) {
    %c0_i32 = arith.constant 0 : i32
    %c0_i32_0 = arith.constant 0 : i32
    return %arg0, %c0_i32, %arg1 : i32, i32, i32
  }
}

module attributes {stable_mosaic.version = 11 : i64} {
  func.func @cnn_kernel(%arg0: i32, %arg1: i32, %arg2: memref<1x32x128xf32, #tpu.memory_space<vmem>>, %arg3: memref<64x32xbf16, #tpu.memory_space<vmem>>, %arg4: memref<64x1xf32, #tpu.memory_space<vmem>>, %arg5: memref<32x64xbf16, #tpu.memory_space<vmem>>, %arg6: memref<32x1xf32, #tpu.memory_space<vmem>>, %arg7: memref<1x32x128xf32, #tpu.memory_space<vmem>>) attributes {dimension_semantics = [#tpu.dimension_semantics<parallel>, #tpu.dimension_semantics<parallel>], iteration_bounds = array<i64: 2, 1>, scalar_prefetch = 0 : i64, scratch_operands = 0 : i64, tpu.core_type = #tpu.core_type<tc>, window_params = [{transform_indices = @transform_0, window_bounds = array<i64: 1, 32, 128>}, {pipeline_mode = #tpu.pipeline_mode<synchronous>, transform_indices = @transform_1, window_bounds = array<i64: 64, 32>}, {pipeline_mode = #tpu.pipeline_mode<synchronous>, transform_indices = @transform_2, window_bounds = array<i64: 64, 1>}, {pipeline_mode = #tpu.pipeline_mode<synchronous>, transform_indices = @transform_3, window_bounds = array<i64: 32, 64>}, {pipeline_mode = #tpu.pipeline_mode<synchronous>, transform_indices = @transform_4, window_bounds = array<i64: 32, 1>}, {transform_indices = @transform_5, window_bounds = array<i64: 1, 32, 128>}]} {
    %c0 = arith.constant 0 : index
    %c0_0 = arith.constant 0 : index
    %0 = vector.load %arg3[%c0, %c0_0] : memref<64x32xbf16, #tpu.memory_space<vmem>>, vector<64x32xbf16>
    %c0_1 = arith.constant 0 : index
    %c0_2 = arith.constant 0 : index
    %1 = vector.load %arg4[%c0_1, %c0_2] : memref<64x1xf32, #tpu.memory_space<vmem>>, vector<64x1xf32>
    %c0_3 = arith.constant 0 : index
    %c0_4 = arith.constant 0 : index
    %2 = vector.load %arg5[%c0_3, %c0_4] : memref<32x64xbf16, #tpu.memory_space<vmem>>, vector<32x64xbf16>
    %c0_5 = arith.constant 0 : index
    %c0_6 = arith.constant 0 : index
    %3 = vector.load %arg6[%c0_5, %c0_6] : memref<32x1xf32, #tpu.memory_space<vmem>>, vector<32x1xf32>
    %c0_7 = arith.constant 0 : index
    %c0_8 = arith.constant 0 : index
    %c0_9 = arith.constant 0 : index
    %4 = vector.load %arg2[%c0_7, %c0_8, %c0_9] : memref<1x32x128xf32, #tpu.memory_space<vmem>>, vector<1x32x128xf32>
    %5 = vector.shape_cast %4 : vector<1x32x128xf32> to vector<32x128xf32>
    %6 = arith.truncf %5 : vector<32x128xf32> to vector<32x128xbf16>
    %cst = arith.constant dense<0.000000e+00> : vector<64x128xf32>
    %7 = tpu.matmul %0, %6, %cst {dimension_numbers = #tpu.dot_dimension_numbers<[1], [0], [0], [1], [0, 0, 1, 1], [], []>} : vector<64x32xbf16>, vector<32x128xbf16>, vector<64x128xf32> -> vector<64x128xf32>
    %8 = vector.broadcast %1 : vector<64x1xf32> to vector<64x128xf32>
    %9 = arith.addf %7, %8 : vector<64x128xf32>
    %cst_10 = arith.constant 0.000000e+00 : f32
    %10 = vector.broadcast %cst_10 : f32 to vector<64x128xf32>
    %11 = arith.maximumf %9, %10 : vector<64x128xf32>
    %12 = arith.truncf %11 : vector<64x128xf32> to vector<64x128xbf16>
    %cst_11 = arith.constant dense<0.000000e+00> : vector<32x128xf32>
    %13 = tpu.matmul %2, %12, %cst_11 {dimension_numbers = #tpu.dot_dimension_numbers<[1], [0], [0], [1], [0, 0, 1, 1], [], []>} : vector<32x64xbf16>, vector<64x128xbf16>, vector<32x128xf32> -> vector<32x128xf32>
    %14 = vector.broadcast %3 : vector<32x1xf32> to vector<32x128xf32>
    %15 = arith.addf %13, %14 : vector<32x128xf32>
    %c0_12 = arith.constant 0 : index
    %c0_13 = arith.constant 0 : index
    %c0_14 = arith.constant 0 : index
    %16 = vector.load %arg7[%c0_12, %c0_13, %c0_14] : memref<1x32x128xf32, #tpu.memory_space<vmem>>, vector<1x32x128xf32>
    %17 = vector.shape_cast %16 : vector<1x32x128xf32> to vector<32x128xf32>
    %18 = vector.shape_cast %15 : vector<32x128xf32> to vector<1x32x128xf32>
    tpu.vector_store %arg7[%c0_12, %c0_13, %c0_14], %18 {strides = array<i32>} : memref<1x32x128xf32, #tpu.memory_space<vmem>>, vector<1x32x128xf32>,
    return
  }
  func.func @transform_0(%arg0: i32, %arg1: i32) -> (i32, i32, i32) {
    %c0_i32 = arith.constant 0 : i32
    %c0_i32_0 = arith.constant 0 : i32
    return %arg0, %c0_i32, %arg1 : i32, i32, i32
  }
  func.func @transform_1(%arg0: i32, %arg1: i32) -> (i32, i32) {
    %c0_i32 = arith.constant 0 : i32
    %c0_i32_0 = arith.constant 0 : i32
    %c0_i32_1 = arith.constant 0 : i32
    return %c0_i32, %c0_i32_0 : i32, i32
  }
  func.func @transform_2(%arg0: i32, %arg1: i32) -> (i32, i32) {
    %c0_i32 = arith.constant 0 : i32
    %c0_i32_0 = arith.constant 0 : i32
    %c0_i32_1 = arith.constant 0 : i32
    return %c0_i32, %c0_i32_0 : i32, i32
  }
  func.func @transform_3(%arg0: i32, %arg1: i32) -> (i32, i32) {
    %c0_i32 = arith.constant 0 : i32
    %c0_i32_0 = arith.constant 0 : i32
    %c0_i32_1 = arith.constant 0 : i32
    return %c0_i32, %c0_i32_0 : i32, i32
  }
  func.func @transform_4(%arg0: i32, %arg1: i32) -> (i32, i32) {
    %c0_i32 = arith.constant 0 : i32
    %c0_i32_0 = arith.constant 0 : i32
    %c0_i32_1 = arith.constant 0 : i32
    return %c0_i32, %c0_i32_0 : i32, i32
  }
  func.func @transform_5(%arg0: i32, %arg1: i32) -> (i32, i32, i32) {
    %c0_i32 = arith.constant 0 : i32
    %c0_i32_0 = arith.constant 0 : i32
    return %arg0, %c0_i32, %arg1 : i32, i32, i32
  }
}

</mosaic_0001>

<bundles_post_ra>
// kernel: tpu_custom_call.1
= control target key start
LH: loop header
LB: loop body
LE: loop exit
PB: predicated region body
PF: predicated region fallthrough
CT: control target
= control target key end

     0   :  { %10 = vsyncpa [#allocation3], 0  ;;  %s1027_s0 = inlined_call_operand.vmem [shape: f32[2,32,128], index: 0, kind: input, shape index: {}]   ;;  %s1028_s1 = inlined_call_operand.vmem [shape: bf16[64,32], index: 1, kind: input, shape index: {}]   ;;  %s1029_s2 = inlined_call_operand.vmem [shape: f32[64,1], index: 2, kind: input, shape index: {}]   ;;  %s1030_s3 = inlined_call_operand.vmem [shape: bf16[32,64], index: 3, kind: input, shape index: {}]   ;;  %s1031_s4 = inlined_call_operand.vmem [shape: f32[32,1], index: 4, kind: input, shape index: {}]   ;;  %s1032_s5 = inlined_call_operand.hbm [shape: f32[2,32,128], index: 5, kind: output, shape index: {}]  }
   0x1   :  { %12 = vsyncpa [#allocation3 + $0x1], 0  ;;  %s853_s18 = smov 0   ;;  %s855_s19 = smov 0  }
   0x2   :  { %s857_s20 = smov 0   ;;  %s859_s21 = smov 0  }
   0x3   :  { %s861_s22 = smov 0   ;;  %s863_s23 = smov 0  }
   0x4 LB: > { %s612_s24 = sadd.s32 4294967295, %s817_s23   ;;  %s613_s25 = sadd.s32 4294967294, %s817_s23   ;;  %s817_s23 = sphi %s863_s23, %s18_s23   ;;  %s813_s22 = sphi %s861_s22, %s1039_s22   ;;  %s809_s21 = sphi %s859_s21, %s1038_s21   ;;  %s805_s20 = sphi %s857_s20, %s1037_s20   ;;  %s801_s19 = sphi %s855_s19, %s1036_s19   ;;  %s797_s18 = sphi %s853_s18, %s1035_s18  }
   0x5   : > { %s30_s26 = sadd.s32 1, %s813_s22  ;;  %s151_s27 = sadd.s32 1, %s805_s20 }
   0x6   : > { %p32_p0 = scmp.ge.s32.totalorder %s30_s26, 2  ;;  %p161_p1 = scmp.ne.s32.totalorder %s805_s20, %s801_s19 }
   0x7   : > { %p162_p2 = scmp.eq.s32.totalorder %s612_s24, 1  ;;  %p167_p3 = scmp.ne.s32.totalorder %s801_s19, %s797_s18 }
   0x8   : > { %s1041_s26 = smov (%p32_p0, %s30_s26), 0  ;;  %p168_p5 = scmp.eq.s32.totalorder %s613_s25, 1 }
   0x9   : > { %p893_p4 = por %p162_p2, %p161_p1  ;;  %s146_s29 = ssub.s32 %s813_s22, %s1041_s26 }
   0xa   : > { %p616_p6 = scmp.ge.s32.totalorder %s817_s23, 1  ;;  %p149_p7 = scmp.eq.s32.totalorder %s146_s29, 0 }
   0xb   : > { %p900_p8 = por %p168_p5, %p167_p3  ;;  %p209_p9 = scmp.lt.s32.totalorder %s817_s23, 3 }
   0xc   : > { %s906_s6 = scalar_select %p149_p7, %s805_s20, %s151_s27  }
   0xd   : > { %p210_p10 = pnand %p616_p6, %p209_p9 }
   0xe   : > { %p240_p11 = scmp.lt.s32.totalorder (!%p210_p10), %s809_s21, 1  ;;  %s237_s24 = sand.u32 (!%p210_p10), 1, %s801_s19  }
   0xf   : > { %213 = sbr.rel (%p210_p10) target bundleno = 477 (0x1dd), region = 40  ;;  %s617_s25 = sshll.u32 (!%p210_p10), %s237_s24, 5 }
  0x10   : > { %s239_s27 = scalar_lea.vmem (!%p210_p10), [#allocation2], %s617_s25  ;;  %s638_s7 = sshll.u32 (!%p210_p10), %s809_s21, 9 }
  0x11   : > { %s534_s29 = sshll.u32 (!%p210_p10), %s239_s27, 4  ;;  %s982_s11 = scalar_lea.sflag (!%p210_p10), [#allocation3], %s237_s24  ;;  %s975_s29 = int_to_ptr.vmem [resolvable:$true] %s534_s29 }
  0x12   : > { %s820_s12 = smov (!%p210_p10), [#allocation2]  }
  0x13   : > { %s745_s13 = sshll.u32 (!%p210_p10), %s820_s12, 4  ;;  %s746_s13 = int_to_ptr.vmem [resolvable:$false] %s745_s13 }
  0x14   : > { %v735_v0 = vld [vmem:[%s1028_s1] sm:$0xff]   ;;  %vm339_vm0 = vcmask 261120   ;;  %s241_s9 = scalar_select %p240_p11, %s809_s21, 1  ;;  %v819_v1 = vmov 0   ;;  %v263_v2 = vld [vmem:[%s1029_s2 + $0x30] sm:$0xff]  ;;  %v264_v4 = vld [vmem:[%s1029_s2 + $0x38] sm:$0xff] }
  0x15   : > { %655 = vmatprep.mubr.msk.bf16.mxu0 %vm339_vm0, %v735_v0  ;;  %733 = vset.pattern.permute.xlu0 %v819_v1  ;;  %v261_v3 = vld [vmem:[%s1029_s2 + $0x20] sm:$0xff]  ;;  %v262_v10 = vld [vmem:[%s1029_s2 + $0x28] sm:$0xff]  ;;  %v259_v12 = vld [vmem:[%s1029_s2 + $0x10] sm:$0xff]  ;;  %vm459_vm1 = vcmask 523264   ;;  %s741_s21 = scalar_lea.vmem %s975_s29, 512  ;;  %s747_s14 = scalar_lea.vmem %s746_s13, 1024 }
  0x16   : > { %s637_s10 = sshll.u32 %s241_s9, 5  ;;  %734 = vset.pattern.permute.xlu1 %v819_v1  ;;  %311 = vperm.xlu0 %733, %v263_v2   ;;  %v260_v13 = vld [vmem:[%s1029_s2 + $0x18] sm:$0xff]  ;;  %v736_v14 = vld [vmem:[%s1028_s1 + $0x8] sm:$0xff]   ;;  %v737_v15 = vld [vmem:[%s1028_s1 + $0x10] sm:$0xff]   ;;  %p742_p12 = scmp.ne.s32.totalorder %s975_s29, %s741_s21 }
  0x17   : > { %s247_s17 = scalar_lea.vmem %s1027_s0, %s637_s10  ;;  %301 = vperm.xlu1 %734, %v261_v3   ;;  %v257_v16 = vld [vmem:[%s1029_s2] sm:$0xff]  ;;  %v258_v17 = vld [vmem:[%s1029_s2 + $0x8] sm:$0xff]  ;;  %v738_v20 = vld [vmem:[%s1028_s1 + $0x18] sm:$0xff]   ;;  %s980_s10 = scalar_lea.hbm %s1032_s5, %s638_s7 }
  0x18   : > { %v275_v5 = vld [vmem:[%s247_s17 + $0x10] sm:$0xff]  ;;  %v276_v6 = vld [vmem:[%s247_s17 + $0x18] sm:$0xff]  ;;  %v273_v7 = vld [vmem:[%s247_s17] sm:$0xff]  ;;  %p743_p13 = pnand %p742_p12, %p893_p4  ;;  %p748_p1 = scmp.lt.s32.totalorder %s975_s29, %s746_s13 }
  0x19   : > { %v278_v8 = vpack.c.bf16 %v276_v6, %v275_v5  ;;  %v274_v9 = vld [vmem:[%s247_s17 + $0x8] sm:$0xff]  ;;  %v269_v18 = vld [vmem:[%s1031_s4] sm:$0xff]  ;;  %v271_v21 = vld [vmem:[%s1031_s4 + $0x10] sm:$0xff]  ;;  %p749_p2 = scmp.lt.s32.totalorder %s747_s14, %s741_s21 }
  0x1a   : > { %v277_v11 = vpack.c.bf16 %v274_v9, %v273_v7  ;;  %316 = vperm.xlu0 %733, %v264_v4   ;;  %v270_v19 = vld [vmem:[%s1031_s4 + $0x8] sm:$0xff]  ;;  %v272_v22 = vld [vmem:[%s1031_s4 + $0x18] sm:$0xff]  ;;  %v739_v23 = vld [vmem:[%s1030_s3] sm:$0xff]   ;;  %p744_p0 = pneg %p743_p13 }
  0x1b   : > { %651 = vmatprep.subr.bf16.mxu0 %v278_v8  ;;  %306 = vperm.xlu1 %734, %v262_v10   ;;  %v740_v60 = vld [vmem:[%s1030_s3 + $0x8] sm:$0xff]   ;;  %p750_p3 = por %p749_p2, %p748_p1 }
  0x1c   : > { %652 = vmatpush3.bf16.msra.mxu0 %v278_v8  ;;  %671 = vmatprep.mubr.msk.bf16.mxu1 %vm459_vm1, %v739_v23 }
  0x1d   : > { %653 = vmatprep.subr.bf16.mxu0 %v277_v11  ;;  %p751_p5 = pnand %p750_p3, %p744_p0 }
  0x1e   : > { %291 = vperm.xlu0 %733, %v259_v12  }
  0x1f   : > { %296 = vperm.xlu1 %734, %v260_v13  }
  0x20   : > { %654 = vmatpush3.bf16.msra.mxu0 %v277_v11 }
  0x22   : > { %281 = vperm.xlu0 %733, %v257_v16  }
  0x23   : > { %656 = vmatmul.mubr.msk.bf16.vlgmr.msra.gmra.mxu0 %vm339_vm0, %v736_v14  ;;  %286 = vperm.xlu1 %734, %v258_v17  }
  0x24   : > { %659 = vmatprep.mubr.msk.bf16.mxu0 %vm339_vm0, %v737_v15 }
  0x26   : > { %431 = vperm.xlu0 %733, %v269_v18  }
  0x27   : > { %436 = vperm.xlu1 %734, %v270_v19  }
  0x2a   : > { %441 = vperm.xlu0 %733, %v271_v21  }
  0x2b   : > { %660 = vmatmul.mubr.msk.bf16.gmra.mxu0 %vm339_vm0, %v738_v20  ;;  %446 = vperm.xlu1 %734, %v272_v22  }
  0x91   : > { %v312_v26 = vpop.permute.xlu0 %311 }
  0x92   : > { %v302_v24 = vpop.permute.xlu1 %301 }
  0x95   : > { %v317_v31 = vpop.permute.xlu0 %316 }
  0x96   : > { %v307_v29 = vpop.permute.xlu1 %306 }
  0x99   : > { %v292_v39 = vpop.permute.xlu0 %291 }
  0x9a   : > { %v297_v35 = vpop.permute.xlu1 %296 }
  0x9d   : > { %v282_v53 = vpop.permute.xlu0 %281 }
  0x9e   : > { %v287_v49 = vpop.permute.xlu1 %286 }
  0xa1   : > { %v432_v61 = vpop.permute.xlu0 %431 }
  0xa2   : > { %v437_v62 = vpop.permute.xlu1 %436 }
  0xa5   : > { %v442_v63 = vpop.permute.xlu0 %441 }
  0xa6   : > { %v447_v4 = vpop.permute.xlu1 %446 }
  0xe3   : > { %v657_v25 = vpop.f32.mrf.mxu0 }
  0xe4   : > { %v395_v45 = vadd.f32 %v657_v25, %v292_v39 }
  0xe5   : > { %v386_v27 = vpop.f32.mrf.mxu0 }
  0xe6   : > { %v419_v54 = vmax.f32 %v395_v45, 0.0  ;;  %v387_v55 = vadd.f32 %v386_v27, %v282_v53 }
  0xe7   : > { %v658_v28 = vpop.f32.mrf.mxu0 }
  0xe8   : > { %v398_v41 = vadd.f32 %v658_v28, %v297_v35  ;;  %v417_v58 = vmax.f32 %v387_v55, 0.0 }
  0xe9   : > { %v389_v30 = vpop.f32.mrf.mxu0 }
  0xea   : > { %v420_v50 = vmax.f32 %v398_v41, 0.0  ;;  %v390_v51 = vadd.f32 %v389_v30, %v287_v49 }
  0xeb   : > { %v661_v32 = vpop.f32.mrf.mxu0 }
  0xec   : > { %v411_v34 = vadd.f32 %v661_v32, %v312_v26  ;;  %v426_v56 = vpack.c.bf16 %v420_v50, %v419_v54  ;;  %v418_v57 = vmax.f32 %v390_v51, 0.0 }
  0xed   : > { %v402_v33 = vpop.f32.mrf.mxu0 }
  0xee   : > { %v403_v37 = vadd.f32 %v402_v33, %v302_v24  ;;  %v423_v42 = vmax.f32 %v411_v34, 0.0  ;;  %v425_v59 = vpack.c.bf16 %v418_v57, %v417_v58 }
  0xef   : > { %v662_v36 = vpop.f32.mrf.mxu0 }
  0xf0   : > { %v414_v38 = vadd.f32 %v662_v36, %v317_v31  ;;  %v421_v46 = vmax.f32 %v403_v37, 0.0 }
  0xf1   : > { %v405_v40 = vpop.f32.mrf.mxu0 }
  0xf2   : > { %v424_v43 = vmax.f32 %v414_v38, 0.0  ;;  %v406_v44 = vadd.f32 %v405_v40, %v307_v29 }
  0xf4   : > { %v422_v47 = vmax.f32 %v406_v44, 0.0  ;;  %v428_v48 = vpack.c.bf16 %v424_v43, %v423_v42 }
  0xf6   : > { %v427_v52 = vpack.c.bf16 %v422_v47, %v421_v46  ;;  %663 = vmatprep.subr.bf16.mxu1 %v428_v48 }
  0xf7   : > { %664 = vmatpush3.bf16.msra.mxu1 %v428_v48 }
  0xf8   : > { %665 = vmatprep.subr.bf16.mxu1 %v427_v52 }
  0xfb   : > { %666 = vmatpush3.bf16.msra.mxu1 %v427_v52 }
  0xfc   : > { %667 = vmatprep.subr.bf16.mxu1 %v426_v56 }
  0xff   : > { %668 = vmatpush3.bf16.msra.mxu1 %v426_v56 }
 0x100   : > { %669 = vmatprep.subr.bf16.mxu1 %v425_v59 }
 0x103   : > { %670 = vmatpush3.bf16.msra.mxu1 %v425_v59 }
 0x106   : > { %672 = vmatmul.mubr.msk.bf16.vlgmr.msra.gmra.mxu1 %vm459_vm1, %v740_v60 }
 0x1c6   : > { %v673_v0 = vpop.f32.mrf.mxu1 }
 0x1c7   : > { %v509_v1 = vadd.f32 %v673_v0, %v442_v63 }
 0x1c8   : > { %v500_v2 = vpop.f32.mrf.mxu1 }
 0x1c9   : > { %517 = vst [vmem:[%s239_s27 + $0x10] sm:$0xff] %v509_v1  ;;  %v501_v3 = vadd.f32 %v500_v2, %v432_v61 }
 0x1ca   : > { %v674_v5 = vpop.f32.mrf.mxu1 }
 0x1cb   : > { %515 = vst [vmem:[%s239_s27] sm:$0xff] %v501_v3  ;;  %v512_v6 = vadd.f32 %v674_v5, %v447_v4 }
 0x1cc   : > { %v503_v7 = vpop.f32.mrf.mxu1 }
 0x1cd   : > { %518 = vst [vmem:[%s239_s27 + $0x18] sm:$0xff] %v512_v6  ;;  %v504_v8 = vadd.f32 %v503_v7, %v437_v62 }
 0x1cf   : > { %516 = vst [vmem:[%s239_s27 + $0x8] sm:$0xff] %v504_v8 }
 0x1d0   : > { %754 = shalt.err (!%p751_p5)
}
 0x1d1   : > { %s755_s15 = scalar_lea.hbm %s980_s10, 512  ;;  %s759_s24 = scalar_lea.hbm %s1032_s5, 1024 }
 0x1d2   : > { %p756_p6 = scmp.ne.s32.totalorder %s980_s10, %s755_s15  ;;  %p760_p10 = scmp.lt.s32.totalorder %s980_s10, %s1032_s5 }
 0x1d3   : > { %p761_p11 = scmp.lt.s32.totalorder %s759_s24, %s755_s15 }
 0x1d4   : > { %p757_p7 = pnand %p756_p6, %p893_p4 }
 0x1d5   : > { %p762_p12 = por %p761_p11, %p760_p10 }
 0x1d6   : > { %p758_p9 = pneg %p757_p7 }
 0x1d8   : > { %p763_p13 = pnand %p762_p12, %p758_p9 }
 0x1da   : > { %766 = shalt.err (!%p763_p13)
}
 0x1db   : > { %s821_s7 = smov 128   ;;  %s822_s8 = smov 8  }
 0x1dc   : > { %675 = dma.vmem_to_hbm [thread:$0]  (%p893_p4), %s975_s29, 512, %s980_s10, %s982_s11, %s821_s7, %s821_s7, %s822_s8  }
 0x1dd PF: > { %p681_p0 = scmp.ge.s32.totalorder %s817_s23, 2  ;;  %s549_s9 = sand.u32 1, %s797_s18  }
 0x1de   : > { %s550_s21 = scalar_lea.sflag [#allocation3], %s549_s9 }
 0x1df   : > { %p678_p1 = pnand %p681_p0, %p900_p8 }
 0x1e1   : > { %p679_p2 = pneg %p678_p1 }
 0x1e3   : > { %792 = dma.done.wait (%p679_p2), %s550_s21, 512  }
 0x1e4   : > { %794 = vsyncadd (%p679_p2), %s550_s21, 4294966784  ;;  %s18_s23 = sadd.s32 1, %s817_s23   ;;  %s1035_s18 = smov %s801_s19 }
 0x1e5   : > { %p15_p3 = scmp.ge.s32.totalorder %s18_s23, 4   ;;  %s1036_s19 = smov %s805_s20 }
 0x1e6   : > { %s1037_s20 = smov %s906_s6  ;;  %s1038_s21 = smov %s813_s22 }
 0x1e7   : > { %s1039_s22 = smov %s1041_s26  ;;  %17 = sbr.rel (!%p15_p3) target bundleno = 4 (0x4), region = 75 }
 0x1ec   :  { %555 = vsyncpa [#allocation3], 1 }
 0x1ed   :  { %557 = vsyncpa [#allocation3 + $0x1], 1 }

// kernel: tpu_custom_call.1
= control target key start
LH: loop header
LB: loop body
LE: loop exit
PB: predicated region body
PF: predicated region fallthrough
CT: control target
= control target key end

     0   :  { %10 = vsyncpa [#allocation3], 0  ;;  %s1027_s0 = inlined_call_operand.vmem [shape: f32[2,32,128], index: 0, kind: input, shape index: {}]   ;;  %s1028_s1 = inlined_call_operand.vmem [shape: bf16[64,32], index: 1, kind: input, shape index: {}]   ;;  %s1029_s2 = inlined_call_operand.vmem [shape: f32[64,1], index: 2, kind: input, shape index: {}]   ;;  %s1030_s3 = inlined_call_operand.vmem [shape: bf16[32,64], index: 3, kind: input, shape index: {}]   ;;  %s1031_s4 = inlined_call_operand.vmem [shape: f32[32,1], index: 4, kind: input, shape index: {}]   ;;  %s1032_s5 = inlined_call_operand.hbm [shape: f32[2,32,128], index: 5, kind: output, shape index: {}]  }
   0x1   :  { %12 = vsyncpa [#allocation3 + $0x1], 0  ;;  %s853_s18 = smov 0   ;;  %s855_s19 = smov 0  }
   0x2   :  { %s857_s20 = smov 0   ;;  %s859_s21 = smov 0  }
   0x3   :  { %s861_s22 = smov 0   ;;  %s863_s23 = smov 0  }
   0x4 LB: > { %s612_s24 = sadd.s32 4294967295, %s817_s23   ;;  %s613_s25 = sadd.s32 4294967294, %s817_s23   ;;  %s817_s23 = sphi %s863_s23, %s18_s23   ;;  %s813_s22 = sphi %s861_s22, %s1039_s22   ;;  %s809_s21 = sphi %s859_s21, %s1038_s21   ;;  %s805_s20 = sphi %s857_s20, %s1037_s20   ;;  %s801_s19 = sphi %s855_s19, %s1036_s19   ;;  %s797_s18 = sphi %s853_s18, %s1035_s18  }
   0x5   : > { %s30_s26 = sadd.s32 1, %s813_s22  ;;  %s151_s27 = sadd.s32 1, %s805_s20 }
   0x6   : > { %p32_p0 = scmp.ge.s32.totalorder %s30_s26, 2  ;;  %p161_p1 = scmp.ne.s32.totalorder %s805_s20, %s801_s19 }
   0x7   : > { %p162_p2 = scmp.eq.s32.totalorder %s612_s24, 1  ;;  %p167_p3 = scmp.ne.s32.totalorder %s801_s19, %s797_s18 }
   0x8   : > { %s1041_s26 = smov (%p32_p0, %s30_s26), 0  ;;  %p168_p5 = scmp.eq.s32.totalorder %s613_s25, 1 }
   0x9   : > { %p893_p4 = por %p162_p2, %p161_p1  ;;  %s146_s29 = ssub.s32 %s813_s22, %s1041_s26 }
   0xa   : > { %p616_p6 = scmp.ge.s32.totalorder %s817_s23, 1  ;;  %p149_p7 = scmp.eq.s32.totalorder %s146_s29, 0 }
   0xb   : > { %p900_p8 = por %p168_p5, %p167_p3  ;;  %p209_p9 = scmp.lt.s32.totalorder %s817_s23, 3 }
   0xc   : > { %s906_s6 = scalar_select %p149_p7, %s805_s20, %s151_s27  }
   0xd   : > { %p210_p10 = pnand %p616_p6, %p209_p9 }
   0xe   : > { %p240_p11 = scmp.lt.s32.totalorder (!%p210_p10), %s809_s21, 1  ;;  %s237_s24 = sand.u32 (!%p210_p10), 1, %s801_s19  }
   0xf   : > { %213 = sbr.rel (%p210_p10) target bundleno = 477 (0x1dd), region = 40  ;;  %s617_s25 = sshll.u32 (!%p210_p10), %s237_s24, 5 }
  0x10   : > { %s239_s27 = scalar_lea.vmem (!%p210_p10), [#allocation2], %s617_s25  ;;  %s638_s7 = sshll.u32 (!%p210_p10), %s809_s21, 9 }
  0x11   : > { %s534_s29 = sshll.u32 (!%p210_p10), %s239_s27, 4  ;;  %s982_s11 = scalar_lea.sflag (!%p210_p10), [#allocation3], %s237_s24  ;;  %s975_s29 = int_to_ptr.vmem [resolvable:$true] %s534_s29 }
  0x12   : > { %s820_s12 = smov (!%p210_p10), [#allocation2]  }
  0x13   : > { %s745_s13 = sshll.u32 (!%p210_p10), %s820_s12, 4  ;;  %s746_s13 = int_to_ptr.vmem [resolvable:$false] %s745_s13 }
  0x14   : > { %v735_v0 = vld [vmem:[%s1028_s1] sm:$0xff]   ;;  %vm339_vm0 = vcmask 261120   ;;  %s241_s9 = scalar_select %p240_p11, %s809_s21, 1  ;;  %v819_v1 = vmov 0   ;;  %v263_v2 = vld [vmem:[%s1029_s2 + $0x30] sm:$0xff]  ;;  %v264_v4 = vld [vmem:[%s1029_s2 + $0x38] sm:$0xff] }
  0x15   : > { %655 = vmatprep.mubr.msk.bf16.mxu0 %vm339_vm0, %v735_v0  ;;  %733 = vset.pattern.permute.xlu0 %v819_v1  ;;  %v261_v3 = vld [vmem:[%s1029_s2 + $0x20] sm:$0xff]  ;;  %v262_v10 = vld [vmem:[%s1029_s2 + $0x28] sm:$0xff]  ;;  %v259_v12 = vld [vmem:[%s1029_s2 + $0x10] sm:$0xff]  ;;  %vm459_vm1 = vcmask 523264   ;;  %s741_s21 = scalar_lea.vmem %s975_s29, 512  ;;  %s747_s14 = scalar_lea.vmem %s746_s13, 1024 }
  0x16   : > { %s637_s10 = sshll.u32 %s241_s9, 5  ;;  %734 = vset.pattern.permute.xlu1 %v819_v1  ;;  %311 = vperm.xlu0 %733, %v263_v2   ;;  %v260_v13 = vld [vmem:[%s1029_s2 + $0x18] sm:$0xff]  ;;  %v736_v14 = vld [vmem:[%s1028_s1 + $0x8] sm:$0xff]   ;;  %v737_v15 = vld [vmem:[%s1028_s1 + $0x10] sm:$0xff]   ;;  %p742_p12 = scmp.ne.s32.totalorder %s975_s29, %s741_s21 }
  0x17   : > { %s247_s17 = scalar_lea.vmem %s1027_s0, %s637_s10  ;;  %301 = vperm.xlu1 %734, %v261_v3   ;;  %v257_v16 = vld [vmem:[%s1029_s2] sm:$0xff]  ;;  %v258_v17 = vld [vmem:[%s1029_s2 + $0x8] sm:$0xff]  ;;  %v738_v20 = vld [vmem:[%s1028_s1 + $0x18] sm:$0xff]   ;;  %s980_s10 = scalar_lea.hbm %s1032_s5, %s638_s7 }
  0x18   : > { %v275_v5 = vld [vmem:[%s247_s17 + $0x10] sm:$0xff]  ;;  %v276_v6 = vld [vmem:[%s247_s17 + $0x18] sm:$0xff]  ;;  %v273_v7 = vld [vmem:[%s247_s17] sm:$0xff]  ;;  %p743_p13 = pnand %p742_p12, %p893_p4  ;;  %p748_p1 = scmp.lt.s32.totalorder %s975_s29, %s746_s13 }
  0x19   : > { %v278_v8 = vpack.c.bf16 %v276_v6, %v275_v5  ;;  %v274_v9 = vld [vmem:[%s247_s17 + $0x8] sm:$0xff]  ;;  %v269_v18 = vld [vmem:[%s1031_s4] sm:$0xff]  ;;  %v271_v21 = vld [vmem:[%s1031_s4 + $0x10] sm:$0xff]  ;;  %p749_p2 = scmp.lt.s32.totalorder %s747_s14, %s741_s21 }
  0x1a   : > { %v277_v11 = vpack.c.bf16 %v274_v9, %v273_v7  ;;  %316 = vperm.xlu0 %733, %v264_v4   ;;  %v270_v19 = vld [vmem:[%s1031_s4 + $0x8] sm:$0xff]  ;;  %v272_v22 = vld [vmem:[%s1031_s4 + $0x18] sm:$0xff]  ;;  %v739_v23 = vld [vmem:[%s1030_s3] sm:$0xff]   ;;  %p744_p0 = pneg %p743_p13 }
  0x1b   : > { %651 = vmatprep.subr.bf16.mxu0 %v278_v8  ;;  %306 = vperm.xlu1 %734, %v262_v10   ;;  %v740_v60 = vld [vmem:[%s1030_s3 + $0x8] sm:$0xff]   ;;  %p750_p3 = por %p749_p2, %p748_p1 }
  0x1c   : > { %652 = vmatpush3.bf16.msra.mxu0 %v278_v8  ;;  %671 = vmatprep.mubr.msk.bf16.mxu1 %vm459_vm1, %v739_v23 }
  0x1d   : > { %653 = vmatprep.subr.bf16.mxu0 %v277_v11  ;;  %p751_p5 = pnand %p750_p3, %p744_p0 }
  0x1e   : > { %291 = vperm.xlu0 %733, %v259_v12  }
  0x1f   : > { %296 = vperm.xlu1 %734, %v260_v13  }
  0x20   : > { %654 = vmatpush3.bf16.msra.mxu0 %v277_v11 }
  0x22   : > { %281 = vperm.xlu0 %733, %v257_v16  }
  0x23   : > { %656 = vmatmul.mubr.msk.bf16.vlgmr.msra.gmra.mxu0 %vm339_vm0, %v736_v14  ;;  %286 = vperm.xlu1 %734, %v258_v17  }
  0x24   : > { %659 = vmatprep.mubr.msk.bf16.mxu0 %vm339_vm0, %v737_v15 }
  0x26   : > { %431 = vperm.xlu0 %733, %v269_v18  }
  0x27   : > { %436 = vperm.xlu1 %734, %v270_v19  }
  0x2a   : > { %441 = vperm.xlu0 %733, %v271_v21  }
  0x2b   : > { %660 = vmatmul.mubr.msk.bf16.gmra.mxu0 %vm339_vm0, %v738_v20  ;;  %446 = vperm.xlu1 %734, %v272_v22  }
  0x91   : > { %v312_v26 = vpop.permute.xlu0 %311 }
  0x92   : > { %v302_v24 = vpop.permute.xlu1 %301 }
  0x95   : > { %v317_v31 = vpop.permute.xlu0 %316 }
  0x96   : > { %v307_v29 = vpop.permute.xlu1 %306 }
  0x99   : > { %v292_v39 = vpop.permute.xlu0 %291 }
  0x9a   : > { %v297_v35 = vpop.permute.xlu1 %296 }
  0x9d   : > { %v282_v53 = vpop.permute.xlu0 %281 }
  0x9e   : > { %v287_v49 = vpop.permute.xlu1 %286 }
  0xa1   : > { %v432_v61 = vpop.permute.xlu0 %431 }
  0xa2   : > { %v437_v62 = vpop.permute.xlu1 %436 }
  0xa5   : > { %v442_v63 = vpop.permute.xlu0 %441 }
  0xa6   : > { %v447_v4 = vpop.permute.xlu1 %446 }
  0xe3   : > { %v657_v25 = vpop.f32.mrf.mxu0 }
  0xe4   : > { %v395_v45 = vadd.f32 %v657_v25, %v292_v39 }
  0xe5   : > { %v386_v27 = vpop.f32.mrf.mxu0 }
  0xe6   : > { %v419_v54 = vmax.f32 %v395_v45, 0.0  ;;  %v387_v55 = vadd.f32 %v386_v27, %v282_v53 }
  0xe7   : > { %v658_v28 = vpop.f32.mrf.mxu0 }
  0xe8   : > { %v398_v41 = vadd.f32 %v658_v28, %v297_v35  ;;  %v417_v58 = vmax.f32 %v387_v55, 0.0 }
  0xe9   : > { %v389_v30 = vpop.f32.mrf.mxu0 }
  0xea   : > { %v420_v50 = vmax.f32 %v398_v41, 0.0  ;;  %v390_v51 = vadd.f32 %v389_v30, %v287_v49 }
  0xeb   : > { %v661_v32 = vpop.f32.mrf.mxu0 }
  0xec   : > { %v411_v34 = vadd.f32 %v661_v32, %v312_v26  ;;  %v426_v56 = vpack.c.bf16 %v420_v50, %v419_v54  ;;  %v418_v57 = vmax.f32 %v390_v51, 0.0 }
  0xed   : > { %v402_v33 = vpop.f32.mrf.mxu0 }
  0xee   : > { %v403_v37 = vadd.f32 %v402_v33, %v302_v24  ;;  %v423_v42 = vmax.f32 %v411_v34, 0.0  ;;  %v425_v59 = vpack.c.bf16 %v418_v57, %v417_v58 }
  0xef   : > { %v662_v36 = vpop.f32.mrf.mxu0 }
  0xf0   : > { %v414_v38 = vadd.f32 %v662_v36, %v317_v31  ;;  %v421_v46 = vmax.f32 %v403_v37, 0.0 }
  0xf1   : > { %v405_v40 = vpop.f32.mrf.mxu0 }
  0xf2   : > { %v424_v43 = vmax.f32 %v414_v38, 0.0  ;;  %v406_v44 = vadd.f32 %v405_v40, %v307_v29 }
  0xf4   : > { %v422_v47 = vmax.f32 %v406_v44, 0.0  ;;  %v428_v48 = vpack.c.bf16 %v424_v43, %v423_v42 }
  0xf6   : > { %v427_v52 = vpack.c.bf16 %v422_v47, %v421_v46  ;;  %663 = vmatprep.subr.bf16.mxu1 %v428_v48 }
  0xf7   : > { %664 = vmatpush3.bf16.msra.mxu1 %v428_v48 }
  0xf8   : > { %665 = vmatprep.subr.bf16.mxu1 %v427_v52 }
  0xfb   : > { %666 = vmatpush3.bf16.msra.mxu1 %v427_v52 }
  0xfc   : > { %667 = vmatprep.subr.bf16.mxu1 %v426_v56 }
  0xff   : > { %668 = vmatpush3.bf16.msra.mxu1 %v426_v56 }
 0x100   : > { %669 = vmatprep.subr.bf16.mxu1 %v425_v59 }
 0x103   : > { %670 = vmatpush3.bf16.msra.mxu1 %v425_v59 }
 0x106   : > { %672 = vmatmul.mubr.msk.bf16.vlgmr.msra.gmra.mxu1 %vm459_vm1, %v740_v60 }
 0x1c6   : > { %v673_v0 = vpop.f32.mrf.mxu1 }
 0x1c7   : > { %v509_v1 = vadd.f32 %v673_v0, %v442_v63 }
 0x1c8   : > { %v500_v2 = vpop.f32.mrf.mxu1 }
 0x1c9   : > { %517 = vst [vmem:[%s239_s27 + $0x10] sm:$0xff] %v509_v1  ;;  %v501_v3 = vadd.f32 %v500_v2, %v432_v61 }
 0x1ca   : > { %v674_v5 = vpop.f32.mrf.mxu1 }
 0x1cb   : > { %515 = vst [vmem:[%s239_s27] sm:$0xff] %v501_v3  ;;  %v512_v6 = vadd.f32 %v674_v5, %v447_v4 }
 0x1cc   : > { %v503_v7 = vpop.f32.mrf.mxu1 }
 0x1cd   : > { %518 = vst [vmem:[%s239_s27 + $0x18] sm:$0xff] %v512_v6  ;;  %v504_v8 = vadd.f32 %v503_v7, %v437_v62 }
 0x1cf   : > { %516 = vst [vmem:[%s239_s27 + $0x8] sm:$0xff] %v504_v8 }
 0x1d0   : > { %754 = shalt.err (!%p751_p5)
}
 0x1d1   : > { %s755_s15 = scalar_lea.hbm %s980_s10, 512  ;;  %s759_s24 = scalar_lea.hbm %s1032_s5, 1024 }
 0x1d2   : > { %p756_p6 = scmp.ne.s32.totalorder %s980_s10, %s755_s15  ;;  %p760_p10 = scmp.lt.s32.totalorder %s980_s10, %s1032_s5 }
 0x1d3   : > { %p761_p11 = scmp.lt.s32.totalorder %s759_s24, %s755_s15 }
 0x1d4   : > { %p757_p7 = pnand %p756_p6, %p893_p4 }
 0x1d5   : > { %p762_p12 = por %p761_p11, %p760_p10 }
 0x1d6   : > { %p758_p9 = pneg %p757_p7 }
 0x1d8   : > { %p763_p13 = pnand %p762_p12, %p758_p9 }
 0x1da   : > { %766 = shalt.err (!%p763_p13)
}
 0x1db   : > { %s821_s7 = smov 128   ;;  %s822_s8 = smov 8  }
 0x1dc   : > { %675 = dma.vmem_to_hbm [thread:$0]  (%p893_p4), %s975_s29, 512, %s980_s10, %s982_s11, %s821_s7, %s821_s7, %s822_s8  }
 0x1dd PF: > { %p681_p0 = scmp.ge.s32.totalorder %s817_s23, 2  ;;  %s549_s9 = sand.u32 1, %s797_s18  }
 0x1de   : > { %s550_s21 = scalar_lea.sflag [#allocation3], %s549_s9 }
 0x1df   : > { %p678_p1 = pnand %p681_p0, %p900_p8 }
 0x1e1   : > { %p679_p2 = pneg %p678_p1 }
 0x1e3   : > { %792 = dma.done.wait (%p679_p2), %s550_s21, 512  }
 0x1e4   : > { %794 = vsyncadd (%p679_p2), %s550_s21, 4294966784  ;;  %s18_s23 = sadd.s32 1, %s817_s23   ;;  %s1035_s18 = smov %s801_s19 }
 0x1e5   : > { %p15_p3 = scmp.ge.s32.totalorder %s18_s23, 4   ;;  %s1036_s19 = smov %s805_s20 }
 0x1e6   : > { %s1037_s20 = smov %s906_s6  ;;  %s1038_s21 = smov %s813_s22 }
 0x1e7   : > { %s1039_s22 = smov %s1041_s26  ;;  %17 = sbr.rel (!%p15_p3) target bundleno = 4 (0x4), region = 75 }
 0x1ec   :  { %555 = vsyncpa [#allocation3], 1 }
 0x1ed   :  { %557 = vsyncpa [#allocation3 + $0x1], 1 }

</bundles_post_ra>
